<compile_context>
chip_gen: v6e
topology: v6e:2x2x1
jax: 0.10.0
libtpu: 0.0.40
codegen_flags: <defaults>
</compile_context>

<pallas_src>
import jax
import jax.numpy as jnp
from jax import lax
from jax.experimental import pallas as pl
from jax.experimental.pallas import tpu as pltpu


def _gvt_kernel(xT_ref, w1t_ref, w2t_ref, b2t_ref, vT_ref, v0T_ref, yT_ref):
    # Feature-major layout: batch is the lane (last, 128-wide) axis, so every
    # load/store is lane-dense.  Two small MXU matmuls, tanh on the EUP, fused
    # scale+shift on the VPU.  b1 is folded into w1t (ones row in xT).
    h = jnp.tanh(
        jnp.dot(w1t_ref[...], xT_ref[...],
                preferred_element_type=jnp.float32,
                precision=lax.Precision.DEFAULT)
    )
    out = jnp.dot(w2t_ref[...], h,
                  preferred_element_type=jnp.float32,
                  precision=lax.Precision.DEFAULT) + b2t_ref[...]
    yT_ref[...] = (out * vT_ref[...] + v0T_ref[...]).astype(yT_ref.dtype)


def _round_up(n, m):
    return ((n + m - 1) // m) * m


def _choose_batch_tiling(batch, tb):
    """Pick (tile, padded_batch, num_tiles).

    Lane-axis tile is a multiple of 128; the grid length is forced even (>=2)
    whenever the padded batch allows it so the 'parallel' batch axis
    load-balances across both v7x TensorCores.
    """
    bp0 = _round_up(batch, 128)
    tb_req = min(_round_up(tb, 128), bp0)
    n = pl.cdiv(bp0, tb_req)
    if bp0 >= 256:                 # can afford >=2 tiles of >=128 lanes
        n = max(n, 2)
        if n % 2:
            n += 1
    tb_eff = _round_up(pl.cdiv(bp0, n), 128)
    n = pl.cdiv(bp0, tb_eff)
    return tb_eff, n * tb_eff, n


def global_velocity_transform(x, v, v0, w1, b1, w2, b2, *, tb=32768):
    """y = (tanh(x @ w1 + b1) @ w2 + b2) * v + v0

    x : [B, D_in]; v, v0 : [B, D_out]
    w1: [D_in, H]; b1: [1, H]; w2: [H, D_out]; b2: [1, D_out]

    tb: lane-axis (batch) tile.  Default 32768 keeps the double-buffered VMEM
    footprint (~2 * 128*tb bytes = 8 MiB) under v5e's 16 MiB default scoped
    VMEM; raise past 32768 only together with vmem_limit_bytes.
    """
    B, d_in = x.shape
    h_dim = w1.shape[1]
    d_out = w2.shape[1]
    dtype = x.dtype
    itemsize = jnp.dtype(dtype).itemsize

    tb_eff, bp, n_tiles = _choose_batch_tiling(B, tb)
    d_in_aug = _round_up(d_in + 1, 8)     # +1 ones row for the folded b1
    d_out_p = _round_up(d_out, 8)
    h_p = _round_up(h_dim, 8)

    # ---- wrapper-side layout plumbing --------------------------------------
    # Feature-major (batch-last) activations.  allow_input_fusion below lets
    # XLA fuse these transpose/pad copies into the pallas-call operands instead
    # of materializing separate HBM buffers.  Zero padding is harmless: padded
    # feature rows contribute 0 to the dots, padded batch columns are zeroed by
    # the zero-padded v/v0 and sliced away at the end.
    ones_col = jnp.ones((B, 1), dtype)
    x_aug = jnp.concatenate([x.astype(dtype), ones_col], axis=1)        # [B, d_in+1]
    xT = jnp.pad(x_aug, ((0, bp - B), (0, d_in_aug - (d_in + 1)))).T    # [d_in_aug, bp]
    vT = jnp.pad(v.astype(dtype), ((0, bp - B), (0, d_out_p - d_out))).T
    v0T = jnp.pad(v0.astype(dtype), ((0, bp - B), (0, d_out_p - d_out))).T

    # Pre-transposed, padded parameters (VMEM-resident across grid steps).
    w1_aug = jnp.concatenate([w1, b1.reshape(1, h_dim)], axis=0)        # [d_in+1, H]
    w1t = jnp.pad(w1_aug,
                  ((0, d_in_aug - (d_in + 1)), (0, h_p - h_dim))).T     # [h_p, d_in_aug]
    w2t = jnp.pad(w2, ((0, h_p - h_dim), (0, d_out_p - d_out))).T       # [d_out_p, h_p]
    b2t = jnp.pad(b2.reshape(d_out, 1), ((0, d_out_p - d_out), (0, 0))) # [d_out_p, 1]
    w1t = w1t.astype(dtype)
    w2t = w2t.astype(dtype)
    b2t = b2t.astype(dtype)

    grid = (n_tiles,)
    batch_tiled = lambda rows: pl.BlockSpec((rows, tb_eff), lambda i: (0, i))
    resident = lambda a: pl.BlockSpec(a.shape, lambda i: (0, 0))

    flops = 2 * bp * (d_in_aug * h_p + h_p * d_out_p) + 3 * bp * d_out_p
    bytes_accessed = itemsize * (
        xT.size + vT.size + v0T.size + w1t.size + w2t.size + b2t.size
        + d_out_p * bp)

    yT = pl.pallas_call(
        _gvt_kernel,
        out_shape=jax.ShapeDtypeStruct((d_out_p, bp), dtype),
        grid=grid,
        in_specs=[
            batch_tiled(d_in_aug),   # xT : streamed over the batch (lane) axis
            resident(w1t),           # weights: constant index_map, stay in VMEM
            resident(w2t),
            resident(b2t),
            batch_tiled(d_out_p),    # v
            batch_tiled(d_out_p),    # v0
        ],
        out_specs=batch_tiled(d_out_p),
        compiler_params=pltpu.CompilerParams(
            # Independent batch tiles -> shard across TensorCores on v7x.
            dimension_semantics=("parallel",),
            # Let XLA fuse the wrapper transpose/pad producers into the inputs.
            allow_input_fusion=[True] * 6,
        ),
        cost_estimate=pl.CostEstimate(
            flops=flops,
            transcendentals=bp * h_p,
            bytes_accessed=bytes_accessed,
        ),
    )(xT, w1t, w2t, b2t, vT, v0T)

    # Undo layout plumbing: [d_out_p, bp] -> [B, d_out].
    return yT[:d_out, :B].T


if __name__ == "__main__":
    # Small, module-consistent shapes.  batch deliberately not a multiple of 128
    # so the padding path is exercised; tb=256 forces a 2-step grid so the
    # pipelined / parallel path runs (production default is tb=32768).
    batch = 300
    input_dim = 6      # generalized coordinates
    hidden_dim = 32
    output_dim = 6     # velocity dimension

    key = jax.random.PRNGKey(0)
    kx, kv, kv0, kw1, kb1, kw2, kb2 = jax.random.split(key, 7)

    x = jax.random.normal(kx, (batch, input_dim), dtype=jnp.float32)
    v = jax.random.normal(kv, (batch, output_dim), dtype=jnp.float32)
    v0 = jax.random.normal(kv0, (batch, output_dim), dtype=jnp.float32)

    # Synthetic parameters (shapes from MLP(input, hidden, output, num_layers=1)),
    # pre-transposed to [in, out] layout (PyTorch Linear stores [out, in]).
    w1 = jax.random.normal(kw1, (input_dim, hidden_dim), dtype=jnp.float32) * 0.1
    b1 = jax.random.normal(kb1, (1, hidden_dim), dtype=jnp.float32) * 0.1
    w2 = jax.random.normal(kw2, (hidden_dim, output_dim), dtype=jnp.float32) * 0.1
    b2 = jax.random.normal(kb2, (1, output_dim), dtype=jnp.float32) * 0.1

    y = global_velocity_transform(x, v, v0, w1, b1, w2, b2, tb=256)
    y = jax.block_until_ready(y)

    # Pure-JAX reference check of the forward semantics.
    # Tolerance note: TPU default matmul precision feeds the MXU bf16 operands
    # (single pass), and b1 is folded through that matmul path in the kernel,
    # so results are close to but not bit-identical with the f32 reference.
    ref = (jnp.tanh(x @ w1 + b1) @ w2 + b2) * v + v0
    assert y.shape == ref.shape, "shape mismatch vs reference"
    assert jnp.allclose(y, ref, atol=5e-3, rtol=5e-3), "mismatch vs reference"

    print("KERNEL_OK")
</pallas_src>

<mosaic_0001>
module attributes {stable_mosaic.version = 11 : i64} {
  func.func @_gvt_kernel(%arg0: i32, %arg1: memref<8x256xf32, #tpu.memory_space<vmem>>, %arg2: memref<32x8xf32, #tpu.memory_space<vmem>>, %arg3: memref<8x32xf32, #tpu.memory_space<vmem>>, %arg4: memref<8x1xf32, #tpu.memory_space<vmem>>, %arg5: memref<8x256xf32, #tpu.memory_space<vmem>>, %arg6: memref<8x256xf32, #tpu.memory_space<vmem>>, %arg7: memref<8x256xf32, #tpu.memory_space<vmem>>) attributes {dimension_semantics = [#tpu.dimension_semantics<parallel>], iteration_bounds = array<i64: 2>, scalar_prefetch = 0 : i64, scratch_operands = 0 : i64, tpu.core_type = #tpu.core_type<tc>, window_params = [{transform_indices = @transform_0, window_bounds = array<i64: 8, 256>}, {pipeline_mode = #tpu.pipeline_mode<synchronous>, transform_indices = @transform_1, window_bounds = array<i64: 32, 8>}, {pipeline_mode = #tpu.pipeline_mode<synchronous>, transform_indices = @transform_2, window_bounds = array<i64: 8, 32>}, {pipeline_mode = #tpu.pipeline_mode<synchronous>, transform_indices = @transform_3, window_bounds = array<i64: 8, 1>}, {transform_indices = @transform_4, window_bounds = array<i64: 8, 256>}, {transform_indices = @transform_5, window_bounds = array<i64: 8, 256>}, {transform_indices = @transform_6, window_bounds = array<i64: 8, 256>}]} {
    %c0 = arith.constant 0 : index
    %c0_0 = arith.constant 0 : index
    %0 = vector.load %arg2[%c0, %c0_0] : memref<32x8xf32, #tpu.memory_space<vmem>>, vector<32x8xf32>
    %c0_1 = arith.constant 0 : index
    %c0_2 = arith.constant 0 : index
    %1 = vector.load %arg1[%c0_1, %c0_2] : memref<8x256xf32, #tpu.memory_space<vmem>>, vector<8x256xf32>
    %cst = arith.constant dense<0.000000e+00> : vector<32x256xf32>
    %2 = tpu.matmul %0, %1, %cst {dimension_numbers = #tpu.dot_dimension_numbers<[1], [0], [0], [1], [0, 0, 1, 1], [], []>} : vector<32x8xf32>, vector<8x256xf32>, vector<32x256xf32> -> vector<32x256xf32>
    %3 = math.tanh %2 : vector<32x256xf32>
    %c0_3 = arith.constant 0 : index
    %c0_4 = arith.constant 0 : index
    %4 = vector.load %arg3[%c0_3, %c0_4] : memref<8x32xf32, #tpu.memory_space<vmem>>, vector<8x32xf32>
    %cst_5 = arith.constant dense<0.000000e+00> : vector<8x256xf32>
    %5 = tpu.matmul %4, %3, %cst_5 {dimension_numbers = #tpu.dot_dimension_numbers<[1], [0], [0], [1], [0, 0, 1, 1], [], []>} : vector<8x32xf32>, vector<32x256xf32>, vector<8x256xf32> -> vector<8x256xf32>
    %c0_6 = arith.constant 0 : index
    %c0_7 = arith.constant 0 : index
    %6 = vector.load %arg4[%c0_6, %c0_7] : memref<8x1xf32, #tpu.memory_space<vmem>>, vector<8x1xf32>
    %7 = vector.broadcast %6 : vector<8x1xf32> to vector<8x256xf32>
    %8 = arith.addf %5, %7 : vector<8x256xf32>
    %c0_8 = arith.constant 0 : index
    %c0_9 = arith.constant 0 : index
    %9 = vector.load %arg5[%c0_8, %c0_9] : memref<8x256xf32, #tpu.memory_space<vmem>>, vector<8x256xf32>
    %10 = arith.mulf %8, %9 : vector<8x256xf32>
    %c0_10 = arith.constant 0 : index
    %c0_11 = arith.constant 0 : index
    %11 = vector.load %arg6[%c0_10, %c0_11] : memref<8x256xf32, #tpu.memory_space<vmem>>, vector<8x256xf32>
    %12 = arith.addf %10, %11 : vector<8x256xf32>
    %c0_12 = arith.constant 0 : index
    %c0_13 = arith.constant 0 : index
    %13 = vector.load %arg7[%c0_12, %c0_13] : memref<8x256xf32, #tpu.memory_space<vmem>>, vector<8x256xf32>
    tpu.vector_store %arg7[%c0_12, %c0_13], %12 {strides = array<i32>} : memref<8x256xf32, #tpu.memory_space<vmem>>, vector<8x256xf32>,
    return
  }
  func.func @transform_0(%arg0: i32) -> (i32, i32) {
    %c0_i32 = arith.constant 0 : i32
    %c0_i32_0 = arith.constant 0 : i32
    return %c0_i32, %arg0 : i32, i32
  }
  func.func @transform_1(%arg0: i32) -> (i32, i32) {
    %c0_i32 = arith.constant 0 : i32
    %c0_i32_0 = arith.constant 0 : i32
    %c0_i32_1 = arith.constant 0 : i32
    return %c0_i32, %c0_i32_0 : i32, i32
  }
  func.func @transform_2(%arg0: i32) -> (i32, i32) {
    %c0_i32 = arith.constant 0 : i32
    %c0_i32_0 = arith.constant 0 : i32
    %c0_i32_1 = arith.constant 0 : i32
    return %c0_i32, %c0_i32_0 : i32, i32
  }
  func.func @transform_3(%arg0: i32) -> (i32, i32) {
    %c0_i32 = arith.constant 0 : i32
    %c0_i32_0 = arith.constant 0 : i32
    %c0_i32_1 = arith.constant 0 : i32
    return %c0_i32, %c0_i32_0 : i32, i32
  }
  func.func @transform_4(%arg0: i32) -> (i32, i32) {
    %c0_i32 = arith.constant 0 : i32
    %c0_i32_0 = arith.constant 0 : i32
    return %c0_i32, %arg0 : i32, i32
  }
  func.func @transform_5(%arg0: i32) -> (i32, i32) {
    %c0_i32 = arith.constant 0 : i32
    %c0_i32_0 = arith.constant 0 : i32
    return %c0_i32, %arg0 : i32, i32
  }
  func.func @transform_6(%arg0: i32) -> (i32, i32) {
    %c0_i32 = arith.constant 0 : i32
    %c0_i32_0 = arith.constant 0 : i32
    return %c0_i32, %arg0 : i32, i32
  }
}

</mosaic_0001>

<bundles_post_ra>
// kernel: tpu_custom_call.1
= control target key start
LH: loop header
LB: loop body
LE: loop exit
PB: predicated region body
PF: predicated region fallthrough
CT: control target
= control target key end

     0   :  { %11 = vsyncpa [#allocation3], 0  ;;  %s1152_s0 = inlined_call_operand.vmem [shape: f32[8,512], index: 0, kind: input, shape index: {}]   ;;  %s1153_s1 = inlined_call_operand.vmem [shape: f32[32,8], index: 1, kind: input, shape index: {}]   ;;  %s1154_s2 = inlined_call_operand.vmem [shape: f32[8,32], index: 2, kind: input, shape index: {}]   ;;  %s1155_s3 = inlined_call_operand.vmem [shape: f32[8,1], index: 3, kind: input, shape index: {}]   ;;  %s1156_s4 = inlined_call_operand.hbm [shape: f32[8,512], index: 4, kind: input, shape index: {}]   ;;  %s1157_s5 = inlined_call_operand.hbm [shape: f32[8,512], index: 5, kind: input, shape index: {}]   ;;  %s1158_s6 = inlined_call_operand.hbm [shape: f32[8,512], index: 6, kind: output, shape index: {}]  }
   0x1   :  { %13 = vsyncpa [#allocation3 + $0x1], 0 }
   0x2   :  { %14 = vsyncpa [#allocation6], 0 }
   0x3   :  { %16 = vsyncpa [#allocation6 + $0x1], 0 }
   0x4   :  { %17 = vsyncpa [#allocation4], 0 }
   0x5   :  { %19 = vsyncpa [#allocation4 + $0x1], 0  ;;  %s923_s21 = smov 0   ;;  %s925_s22 = smov 0  }
   0x6   :  { %s927_s23 = smov 0   ;;  %s929_s24 = smov 0  }
   0x7 LB: > { %s944_s25 = sadd.s32 4294967295, %s881_s24   ;;  %s659_s26 = sadd.s32 4294967294, %s881_s24   ;;  %s881_s24 = sphi %s929_s24, %s1179_s24   ;;  %s877_s23 = sphi %s927_s23, %s1178_s23   ;;  %s873_s22 = sphi %s925_s22, %s1177_s22   ;;  %s869_s21 = sphi %s923_s21, %s1176_s21  }
   0x8   : > { %s948_s27 = sadd.s32 1, %s881_s24   ;;  %s121_s28 = sadd.s32 1, %s877_s23 }
   0x9   : > { %s118_s29 = ssub.s32 %s881_s24, %s948_s27  ;;  %p128_p0 = scmp.ne.s32.totalorder %s877_s23, %s873_s22 }
   0xa   : > { %p119_p1 = scmp.eq.s32.totalorder %s118_s29, 0  ;;  %p129_p2 = scmp.eq.s32.totalorder %s881_s24, 0 }
   0xb   : > { %p134_p3 = scmp.ne.s32.totalorder %s873_s22, %s869_s21  ;;  %p135_p4 = scmp.eq.s32.totalorder %s944_s25, 0 }
   0xc   : > { %s960_s30 = scalar_select %p119_p1, %s877_s23, %s121_s28  }
   0xd   : > { %p962_p5 = por %p129_p2, %p128_p0  ;;  %p966_p6 = por %p135_p4, %p134_p3 }
   0xe   : > { %p184_p7 = scmp.eq.s32.totalorder %s944_s25, 1  ;;  %p190_p8 = scmp.eq.s32.totalorder %s659_s26, 1 }
   0xf   : > { %s1163_s8 = scalar_select %p966_p6, 1, 0 }
  0x10   : > { %p704_p10 = scmp.lt.s32.totalorder %s881_s24, 2  ;;  %p973_p11 = por %p184_p7, %p128_p0 }
  0x11   : > { %p977_p12 = por %p190_p8, %p134_p3  ;;  %s982_s11 = sand.u32 1, %s877_s23  }
  0x12   : > { %s1164_s9 = scalar_select %p973_p11, 1, 0 }
  0x13   : > { %s1165_s10 = scalar_select %p977_p12, 1, 0 }
  0x14   : > { %s684_s12 = sshll.u32 %s881_s24, 8  ;;  %s1159_s13 = sshll.u32 %s982_s11, 4 }
  0x15   : > { %s991_s16 = scalar_lea.hbm %s1156_s4, %s684_s12  ;;  %s232_s17 = scalar_lea.vmem [#allocation2], %s1159_s13 }
  0x16   : > { %s240_s18 = sshll.u32 %s232_s17, 4  ;;  %p997_p13 = pnand %p704_p10, %p962_p5  ;;  %s1001_s18 = int_to_ptr.vmem [resolvable:$true] %s240_s18 }
  0x17   : > { %s229_s20 = scalar_lea.sflag [#allocation3], %s982_s11  ;;  %s757_s26 = scalar_lea.hbm %s991_s16, 256 }
  0x18   : > { %p758_p2 = scmp.ne.s32.totalorder %s991_s16, %s757_s26  ;;  %p759_p3 = pneg %p997_p13 }
  0x19   : > { %s762_s7 = scalar_lea.hbm %s1156_s4, 512  ;;  %p763_p5 = scmp.lt.s32.totalorder %s991_s16, %s1156_s4 }
  0x1a   : > { %p760_p4 = pnand %p759_p3, %p758_p2  ;;  %p764_p8 = scmp.lt.s32.totalorder %s762_s7, %s757_s26 }
  0x1c   : > { %p761_p7 = pneg %p760_p4  ;;  %p765_p10 = por %p764_p8, %p763_p5 }
  0x1e   : > { %p766_p9 = pnand %p765_p10, %p761_p7 }
  0x20   : > { %769 = shalt.err (!%p766_p9)
}
  0x21   : > { %s770_s17 = scalar_lea.vmem %s1001_s18, 256  ;;  %s883_s28 = smov [#allocation2]  }
  0x22   : > { %p771_p0 = scmp.ne.s32.totalorder %s1001_s18, %s770_s17  ;;  %s775_s29 = sshll.u32 %s883_s28, 4  ;;  %s776_s29 = int_to_ptr.vmem [resolvable:$false] %s775_s29 }
  0x23   : > { %s777_s13 = scalar_lea.vmem %s776_s29, 512  ;;  %p778_p1 = scmp.lt.s32.totalorder %s1001_s18, %s776_s29 }
  0x24   : > { %p773_p2 = pnand %p771_p0, %p759_p3  ;;  %p779_p12 = scmp.lt.s32.totalorder %s777_s13, %s770_s17 }
  0x26   : > { %p774_p4 = pneg %p773_p2  ;;  %p780_p11 = por %p779_p12, %p778_p1 }
  0x28   : > { %p781_p5 = pnand %p780_p11, %p774_p4 }
  0x2a   : > { %784 = shalt.err (!%p781_p5)
}
  0x2b   : > { %696 = dma.hbm_to_vmem [thread:$0]  (!%p997_p13), %s991_s16, 256, %s1001_s18, %s229_s20  }
  0x2c   : > { %p1167_p9 = scmp.lt.s32.totalorder %s881_s24, 3  ;;  %p1168_p0 = scmp.ge.s32.totalorder %s881_s24, 1 }
  0x2d   : > { %s1043_s14 = scalar_lea.hbm %s1157_s5, %s684_s12  ;;  %s1170_s15 = sshll.u32 %s982_s11, 4 }
  0x2e   : > { %p1034_p7 = pnand %p1168_p0, %p1167_p9  ;;  %s251_s17 = scalar_lea.vmem [#allocation5], %s1170_s15 }
  0x2f   : > { %s259_s28 = sshll.u32 %s251_s17, 4  ;;  %s248_s16 = scalar_lea.sflag [#allocation6], %s982_s11  ;;  %s260_s28 = int_to_ptr.vmem [resolvable:$true] %s259_s28 }
  0x30   : > { %s1169_s26 = scalar_select %p1034_p7, 1, 0 }
  0x31   : > { %s785_s18 = scalar_lea.hbm %s1043_s14, 256  ;;  %s790_s13 = scalar_lea.hbm %s1157_s5, 512 }
  0x32   : > { %p786_p11 = scmp.ne.s32.totalorder %s1043_s14, %s785_s18  ;;  %p791_p8 = scmp.lt.s32.totalorder %s1043_s14, %s1157_s5 }
  0x33   : > { %p792_p10 = scmp.lt.s32.totalorder %s790_s13, %s785_s18 }
  0x34   : > { %p788_p12 = pnand %p786_p11, %p759_p3 }
  0x35   : > { %p793_p2 = por %p792_p10, %p791_p8 }
  0x36   : > { %p789_p1 = pneg %p788_p12 }
  0x38   : > { %p794_p4 = pnand %p793_p2, %p789_p1 }
  0x3a   : > { %797 = shalt.err (!%p794_p4)
}
  0x3b   : > { %s798_s15 = scalar_lea.vmem %s260_s28, 256  ;;  %s884_s11 = smov [#allocation5]  }
  0x3c   : > { %p799_p5 = scmp.ne.s32.totalorder %s260_s28, %s798_s15  ;;  %s803_s17 = sshll.u32 %s884_s11, 4  ;;  %s804_s17 = int_to_ptr.vmem [resolvable:$false] %s803_s17 }
  0x3d   : > { %s805_s20 = scalar_lea.vmem %s804_s17, 512  ;;  %p806_p11 = scmp.lt.s32.totalorder %s260_s28, %s804_s17 }
  0x3e   : > { %p801_p9 = pnand %p799_p5, %p759_p3  ;;  %p807_p12 = scmp.lt.s32.totalorder %s805_s20, %s798_s15 }
  0x40   : > { %p802_p0 = pneg %p801_p9  ;;  %p808_p6 = por %p807_p12, %p806_p11 }
  0x42   : > { %p809_p7 = pnand %p808_p6, %p802_p0 }
  0x44   : > { %812 = shalt.err (!%p809_p7)
}
  0x45   : > { %699 = dma.hbm_to_vmem [thread:$0]  (!%p997_p13), %s1043_s14, 256, %s260_s28, %s248_s16  }
  0x46   : > { %p1171_p1 = scmp.ne.s32.totalorder %s1169_s26, 0 }
  0x47   : > { %s1069_s18 = sand.u32 (!%p1171_p1), 1, %s873_s22   ;;  %p1172_p6 = scmp.ne.s32.totalorder (!%p1171_p1), %s1163_s8, 0 }
  0x48   : > { %268 = sbr.rel (%p1171_p1) target bundleno = 532 (0x214), region = 44  ;;  %s1072_s29 = sshll.u32 (!%p1171_p1), %s1069_s18, 4 }
  0x49   : > { %s271_s13 = scalar_lea.sflag (!%p1171_p1), [#allocation3], %s1069_s18  ;;  %s274_s12 = scalar_lea.vmem (!%p1171_p1), [#allocation2], %s1072_s29 }
  0x4d   : > { %856 = dma.done.wait (%p1172_p6), %s271_s13, 256  }
  0x4e   : > { %858 = vsyncadd (%p1172_p6), %s271_s13, 4294967040  ;;  %s280_s19 = scalar_lea.sflag [#allocation6], %s1069_s18  ;;  %s283_s26 = scalar_lea.vmem [#allocation5], %s1072_s29 }
  0x4f   : > { %860 = dma.done.wait (%p1172_p6), %s280_s19, 256  }
  0x50   : > { %862 = vsyncadd (%p1172_p6), %s280_s19, 4294967040  ;;  %s672_s14 = sshll.u32 %s944_s25, 1  ;;  %v885_v0 = vmov 0.0   ;;  %v331_v3 = vld [vmem:[%s1153_s1] sm:$0xff]  ;;  %vm337_vm0 = vcmask 64512   ;;  %v332_v4 = vld [vmem:[%s1153_s1 + $0x8] sm:$0xff] }
  0x51   : > { %p323_p13 = scmp.lt.s32.totalorder %s672_s14, 3  ;;  %414 = vmatprep.mubr.f32.mxu0 %v885_v0  ;;  %522 = vmatprep.mubr.f32.mxu1 %v885_v0  ;;  %v333_v5 = vld [vmem:[%s1153_s1 + $0x10] sm:$0xff]  ;;  %v334_v6 = vld [vmem:[%s1153_s1 + $0x18] sm:$0xff]  ;;  %v448_v7 = vld [vmem:[%s1155_s3] sm:$0xff]  ;;  %v886_v8 = vmov 0   ;;  %vm454_vm1 = vcmask 261120  }
  0x52   : > { %740 = vset.pattern.permute.xlu0 %v886_v8  ;;  %v447_v24 = vld [vmem:[%s1154_s2] sm:$0xff]  ;;  %v530_v32 = vld [vmem:[%s274_s12 + $0x8] sm:$0xff]  ;;  %s686_s17 = sshll.u32 %s944_s25, 8  ;;  %s321_s8 = scalar_lea.vmem [#allocation7], %s1072_s29 }
  0x53   : > { %s1181_s14 = smov (!%p323_p13, %s672_s14), 3  ;;  %451 = vperm.xlu0 %740, %v448_v7   ;;  %v529_v28 = vld [vmem:[%s274_s12] sm:$0xff]  ;;  %v534_v35 = vld [vmem:[%s283_s26 + $0x8] sm:$0xff]  ;;  %s554_s20 = sshll.u32 %s321_s8, 4  ;;  %s555_s20 = int_to_ptr.vmem [resolvable:$true] %s554_s20 }
  0x54   : > { %s673_s28 = sshll.u32 %s1181_s14, 3  ;;  %v533_v30 = vld [vmem:[%s283_s26] sm:$0xff]  ;;  %s552_s14 = scalar_lea.hbm %s1158_s6, %s686_s17 }
  0x55   : > { %s326_s15 = scalar_lea.vmem %s1152_s0, %s673_s28  ;;  %s540_s28 = scalar_lea.sflag [#allocation4], %s1069_s18 }
  0x56   : > { %v336_v1 = vld [vmem:[%s326_s15 + $0x8] sm:$0xff]  ;;  %v335_v2 = vld [vmem:[%s326_s15] sm:$0xff]  ;;  %s813_s12 = scalar_lea.vmem %s555_s20, 256  ;;  %p1173_p7 = scmp.ne.s32.totalorder %s1164_s9, 0 }
  0x57   : > { %380 = vmatprep.subr.mxu0 %v336_v1  ;;  %p814_p3 = scmp.ne.s32.totalorder %s555_s20, %s813_s12  ;;  %s887_s26 = smov [#allocation7]  }
  0x58   : > { %381 = vmatpush1.msra.mxu0 %v335_v2  ;;  %s817_s25 = sshll.u32 %s887_s26, 4  ;;  %s818_s25 = int_to_ptr.vmem [resolvable:$false] %s817_s25 }
  0x59   : > { %674 = vmatmul.mubr.msk.f32.vlgmr.msra.gmra.mxu0 %vm337_vm0, %v331_v3  ;;  %p815_p8 = pnand %p814_p3, %p1173_p7  ;;  %s819_s29 = scalar_lea.vmem %s818_s25, 512 }
  0x5a   : > { %420 = vmatprep.mubr.f32.mxu0 %v885_v0  ;;  %p820_p2 = scmp.lt.s32.totalorder %s555_s20, %s818_s25  ;;  %p821_p4 = scmp.lt.s32.totalorder %s819_s29, %s813_s12 }
  0x5b   : > { %p816_p10 = pneg %p815_p8 }
  0x5c   : > { %p822_p5 = por %p821_p4, %p820_p2 }
  0x5d   : > { %675 = vmatmul.mubr.msk.f32.gmra.mxu0 %vm337_vm0, %v332_v4 }
  0x5e   : > { %426 = vmatprep.mubr.f32.mxu0 %v885_v0  ;;  %p823_p9 = pnand %p822_p5, %p816_p10 }
  0x61   : > { %676 = vmatmul.mubr.msk.f32.gmra.mxu0 %vm337_vm0, %v333_v5 }
  0x62   : > { %432 = vmatprep.mubr.f32.mxu0 %v885_v0 }
  0x65   : > { %677 = vmatmul.mubr.msk.f32.gmra.mxu0 %vm337_vm0, %v334_v6 }
  0xce   : > { %v452_v26 = vpop.permute.xlu0 %451 }
 0x119   : > { %v416_v9 = vpop.f32.mrf.mxu0 }
 0x11b   : > { %v418_v10 = vpop.f32.mrf.mxu0 }
 0x11d   : > { %v422_v11 = vpop.f32.mrf.mxu0 }
 0x11f   : > { %v424_v12 = vpop.f32.mrf.mxu0 }
 0x121   : > { %v428_v13 = vpop.f32.mrf.mxu0 }
 0x123   : > { %v430_v14 = vpop.f32.mrf.mxu0 }
 0x125   : > { %v434_v15 = vpop.f32.mrf.mxu0 }
 0x127   : > { %v436_v16 = vpop.f32.mrf.mxu0 }
 0x128   : > { %741 = vtanh.f32 %v436_v16 }
 0x129   : > { %743 = vtanh.f32 %v434_v15 }
 0x12a   : > { %745 = vtanh.f32 %v430_v14 }
 0x12b   : > { %747 = vtanh.f32 %v428_v13 }
 0x12c   : > { %749 = vtanh.f32 %v424_v12 }
 0x12d   : > { %751 = vtanh.f32 %v422_v11 }
 0x12e   : > { %753 = vtanh.f32 %v418_v10 }
 0x12f   : > { %755 = vtanh.f32 %v416_v9 }
 0x135   : > { %v742_v17 = vpop.eup %741 }
 0x136   : > { %v744_v18 = vpop.eup %743  ;;  %482 = vmatprep.subr.mxu1 %v742_v17 }
 0x137   : > { %v746_v19 = vpop.eup %745  ;;  %483 = vmatpush1.msra.mxu1 %v744_v18 }
 0x138   : > { %v748_v20 = vpop.eup %747  ;;  %484 = vmatprep.subr.mxu1 %v746_v19 }
 0x139   : > { %v750_v21 = vpop.eup %749  ;;  %485 = vmatpush1.msra.mxu1 %v748_v20 }
 0x13a   : > { %v752_v22 = vpop.eup %751  ;;  %486 = vmatprep.subr.mxu1 %v750_v21 }
 0x13b   : > { %v754_v23 = vpop.eup %753  ;;  %487 = vmatpush1.msra.mxu1 %v752_v22 }
 0x13c   : > { %v756_v25 = vpop.eup %755  ;;  %488 = vmatprep.subr.mxu1 %v754_v23 }
 0x13d   : > { %489 = vmatpush1.msra.mxu1 %v756_v25 }
 0x13e   : > { %678 = vmatmul.mubr.msk.f32.vlgmr.msra.gmra.mxu1 %vm454_vm1, %v447_v24 }
 0x1fe   : > { %v524_v27 = vpop.f32.mrf.mxu1 }
 0x1ff   : > { %v525_v29 = vadd.f32 %v524_v27, %v452_v26 }
 0x200   : > { %v526_v31 = vpop.f32.mrf.mxu1 }
 0x201   : > { %v531_v33 = vmul.f32 %v529_v28, %v525_v29  ;;  %v527_v34 = vadd.f32 %v526_v31, %v452_v26 }
 0x203   : > { %v535_v36 = vadd.f32 %v533_v30, %v531_v33  ;;  %v532_v37 = vmul.f32 %v530_v32, %v527_v34 }
 0x205   : > { %v536_v38 = vadd.f32 %v534_v35, %v532_v37  ;;  %537 = vst [vmem:[%s321_s8] sm:$0xff] %v535_v36 }
 0x207   : > { %538 = vst [vmem:[%s321_s8 + $0x8] sm:$0xff] %v536_v38 }
 0x208   : > { %826 = shalt.err (!%p823_p9)
}
 0x209   : > { %s827_s16 = scalar_lea.hbm %s552_s14, 256  ;;  %s831_s15 = scalar_lea.hbm %s1158_s6, 512 }
 0x20a   : > { %p828_p0 = scmp.ne.s32.totalorder %s552_s14, %s827_s16  ;;  %p832_p1 = scmp.lt.s32.totalorder %s552_s14, %s1158_s6 }
 0x20b   : > { %p833_p6 = scmp.lt.s32.totalorder %s831_s15, %s827_s16 }
 0x20c   : > { %p829_p11 = pnand %p828_p0, %p1173_p7 }
 0x20d   : > { %p834_p13 = por %p833_p6, %p832_p1 }
 0x20e   : > { %p830_p12 = pneg %p829_p11 }
 0x210   : > { %p835_p3 = pnand %p834_p13, %p830_p12 }
 0x212   : > { %838 = shalt.err (!%p835_p3)
}
 0x213   : > { %691 = dma.vmem_to_hbm [thread:$0]  (%p1173_p7), %s555_s20, 256, %s552_s14, %s540_s28  }
 0x214 PF: > { %s566_s8 = sand.u32 1, %s869_s21   ;;  %p1174_p8 = scmp.ne.s32.totalorder %s1165_s10, 0 }
 0x215   : > { %p1175_p10 = scmp.ge.s32.totalorder %s881_s24, 2  ;;  %s567_s13 = scalar_lea.sflag [#allocation4], %s566_s8 }
 0x217   : > { %p701_p2 = pnand %p1175_p10, %p1174_p8 }
 0x219   : > { %p702_p4 = pneg %p701_p2 }
 0x21b   : > { %864 = dma.done.wait (%p702_p4), %s567_s13, 256  }
 0x21c   : > { %866 = vsyncadd (%p702_p4), %s567_s13, 4294967040  ;;  %p22_p5 = scmp.ge.s32.totalorder %s948_s27, 4   ;;  %s1176_s21 = smov %s873_s22 }
 0x21d   : > { %s1177_s22 = smov %s877_s23  ;;  %s1178_s23 = smov %s960_s30 }
 0x21e   : > { %s1179_s24 = smov %s948_s27  ;;  %24 = sbr.rel (!%p22_p5) target bundleno = 7 (0x7), region = 105 }
 0x223   :  { %572 = vsyncpa [#allocation3], 1 }
 0x224   :  { %574 = vsyncpa [#allocation3 + $0x1], 1 }
 0x225   :  { %575 = vsyncpa [#allocation6], 1 }
 0x226   :  { %577 = vsyncpa [#allocation6 + $0x1], 1 }
 0x227   :  { %578 = vsyncpa [#allocation4], 1 }
 0x228   :  { %580 = vsyncpa [#allocation4 + $0x1], 1 }

</bundles_post_ra>
